<compile_context>
chip_gen: v7x
topology: tpu7x:2x2x1
jax: 0.10.0
libtpu: 0.0.40
codegen_flags: <defaults>
</compile_context>

<pallas_src>
import math

import numpy as np
import jax
import jax.numpy as jnp
from jax.experimental import pallas as pl
from jax.experimental.pallas import tpu as pltpu


# ----------------------------------------------------------------------------
# Clenshaw-Curtis quadrature weights / nodes (matches compute_cc_weights_v1).
# ----------------------------------------------------------------------------
def compute_cc_weights(nb_steps):
    lam = np.arange(0, nb_steps + 1, 1).reshape(-1, 1)
    lam = np.cos((lam @ lam.T) * math.pi / nb_steps)
    lam[:, 0] = 0.5
    lam[:, -1] = 0.5 * lam[:, -1]
    lam = lam * 2 / nb_steps
    W = np.arange(0, nb_steps + 1, 1).reshape(-1, 1)
    W[np.arange(1, nb_steps + 1, 2)] = 0
    W = 2 / (1 - W ** 2)
    W[0] = 1
    W[np.arange(1, nb_steps + 1, 2)] = 0
    cc_weights = (lam.T @ W).astype(np.float32)                       # (S, 1)
    steps = np.cos(
        np.arange(0, nb_steps + 1, 1).reshape(-1, 1) * math.pi / nb_steps
    ).astype(np.float32)                                              # (S, 1)
    return cc_weights, steps


def build_quadrature_constants(nb_steps, tb, s_pad):
    """Lane-tiled quadrature constants for one batch tile of size tb.

    t_tiled [0, j*s_pad + s] = (steps[s]+1)/2        (eval-point scale)
    cc_tiled[0, j*s_pad + s] = cc_weights[s] * 0.5   (weights; 0 on padding)
    sel     [j*s_pad + s, j] = 1.0                   (segmented lane reduction)
    Padded steps (s >= S) get t=0 and weight 0, so they contribute nothing.
    """
    cc, steps = compute_cc_weights(nb_steps)
    S = nb_steps + 1
    assert s_pad >= S and (tb * s_pad) % 128 == 0
    t_pad = np.zeros((s_pad,), np.float32)
    t_pad[:S] = (steps[:, 0] + 1.0) * 0.5
    cc_half = np.zeros((s_pad,), np.float32)
    cc_half[:S] = cc[:, 0] * 0.5
    n_tile = tb * s_pad
    t_tiled = np.tile(t_pad, tb).reshape(1, n_tile)
    cc_tiled = np.tile(cc_half, tb).reshape(1, n_tile)
    sel = np.kron(np.eye(tb, dtype=np.float32),
                  np.ones((s_pad, 1), np.float32))        # (n_tile, tb)
    return (jnp.asarray(t_tiled), jnp.asarray(cc_tiled), jnp.asarray(sel),
            cc, steps)


# ----------------------------------------------------------------------------
# Pallas kernel: integrand MLP + Clenshaw-Curtis weighted reduction.
# Lane-major: flattened batch*steps axis N on lanes, hidden dims on sublanes.
# ----------------------------------------------------------------------------
def monotonic_kernel(x_ref, xe_ref, t_ref, cc_ref, w1_ref, b1_ref, w2t_ref,
                     b2_ref, w3_ref, b3_ref, sel_ref, o_ref):
    # Quadrature eval points pts[0, b*s_pad + s] = x[b] * t[s]: one VPU
    # multiply (replaces the old O(tb^2*s_pad) expansion matmul).
    pts = xe_ref[...] * t_ref[...]                                    # (1, N)

    # Layer 1: Linear(1 -> H1) + ReLU.  Scalar input dim => broadcast FMA on
    # the VPU.  (Could be moved to the MXU as a (H1,1)@(1,N) outer product if
    # the VALU slot ever becomes the binding resource.)
    h = jnp.maximum(w1_ref[...] * pts + b1_ref[...], 0.0)             # (H1, N)

    # Layer 2: Linear(H1 -> H2) + ReLU as a single (H2,H1)@(H1,N) MXU matmul.
    h = jnp.dot(w2t_ref[...], h,
                preferred_element_type=jnp.float32) + b2_ref[...]
    h = jnp.maximum(h, 0.0)                                           # (H2, N)

    # Layer 3: Linear(H2 -> 1) as a (1,H2)@(H2,N) matmul -> lane-dense row.
    dz = jnp.dot(w3_ref[...], h,
                 preferred_element_type=jnp.float32) + b3_ref[0]      # (1, N)

    # ELU + 1 (IntegrandNN_v1.act).  exp(x)-1 (not expm1) to stay on a
    # guaranteed Mosaic lowering path; abs error near 0 is ~1e-7 in f32.
    dz = jnp.where(dz > 0.0, dz, jnp.exp(dz) - 1.0) + 1.0             # (1, N)

    # Weight by cc[s]/2 on the VPU (zero on padded lanes), then the segmented
    # per-batch lane sum via a 0/1 block-diagonal selector matmul, then * x:
    #   out[b] = x[b]/2 * sum_s cc[s] * dz[b, s]
    zw = dz * cc_ref[...]                                             # (1, N)
    z = jnp.dot(zw, sel_ref[...], preferred_element_type=jnp.float32)  # (1, tb)
    o_ref[...] = z * x_ref[...]


def monotonic_nn_forward(x, t_tiled, cc_tiled, sel_tile, w1_col, b1_col, w2t,
                         b2_col, w3_row, b3, *, s_pad, tb=None):
    B = x.shape[0]
    if tb is None:
        tb = B
    assert B % tb == 0
    # Multi-step grids need lane-dense (1, tb) x/out blocks; a single grid
    # step may use the full (possibly unaligned) batch.
    assert tb == B or tb % 128 == 0
    n_tile = tb * s_pad
    assert n_tile % 128 == 0
    assert t_tiled.shape == (1, n_tile)
    assert cc_tiled.shape == (1, n_tile)
    assert sel_tile.shape == (n_tile, tb)
    H1 = w1_col.shape[0]
    H2 = w2t.shape[0]

    x_row = x.reshape(1, B).astype(jnp.float32)          # lane-dense batch
    # Pre-expanded x: x_exp[0, b*s_pad + s] = x[b] (trivial XLA repeat).
    x_exp = jnp.repeat(x_row, s_pad, axis=1)             # (1, B*s_pad)

    def const(shape):
        return pl.BlockSpec(shape, lambda i: (0, 0))

    out_row = pl.pallas_call(
        monotonic_kernel,
        out_shape=jax.ShapeDtypeStruct((1, B), jnp.float32),
        grid=(B // tb,),
        in_specs=[
            pl.BlockSpec((1, tb), lambda i: (0, i)),             # x row
            pl.BlockSpec((1, n_tile), lambda i: (0, i)),         # x expanded
            const((1, n_tile)),                                  # t tiled
            const((1, n_tile)),                                  # cc/2 tiled
            const((H1, 1)),                                      # W1^T column
            const((H1, 1)),                                      # b1 column
            const((H2, H1)),                                     # W2^T
            const((H2, 1)),                                      # b2 column
            const((1, H2)),                                      # W3 row
            pl.BlockSpec(memory_space=pltpu.MemorySpace.SMEM),   # b3 scalar
            const((n_tile, tb)),                                 # 0/1 selector
        ],
        out_specs=pl.BlockSpec((1, tb), lambda i: (0, i)),
        compiler_params=pltpu.CompilerParams(
            dimension_semantics=("parallel",)),
    )(x_row, x_exp, t_tiled, cc_tiled, w1_col, b1_col, w2t, b2_col,
      w3_row, b3, sel_tile)
    return out_row.reshape(B, 1)


# ----------------------------------------------------------------------------
# Pure-JAX reference (mirrors the PyTorch forward exactly).
# ----------------------------------------------------------------------------
def reference_forward(x, steps, cc, w1, b1, w2, b2, w3, b3):
    B = x.shape[0]
    S = steps.shape[0]
    t = ((steps[:, 0] + 1.0) * 0.5).reshape(1, S)    # (1, S)
    pts = (x * t).reshape(B * S, 1)                  # X_steps
    h = jnp.maximum(pts @ w1 + b1, 0.0)
    h = jnp.maximum(h @ w2 + b2, 0.0)
    o = h @ w3 + b3                                  # (B*S, 1)
    o = jnp.where(o > 0.0, o, jnp.exp(o) - 1.0) + 1.0
    dz = o.reshape(B, S)
    z = jnp.sum(dz * cc[:, 0].reshape(1, S), axis=1, keepdims=True)
    return z * x * 0.5


if __name__ == "__main__":
    B = 16                 # batch
    hidden_layers = [32, 32]
    nb_steps = 50          # default of MonotonicNN_v1
    H1, H2 = hidden_layers
    S_PAD = 56             # smallest pad of S=51 with tb*S_PAD % 128 == 0

    tb = B                 # single grid step at this batch size (v5e/v6e);
                           # for v7x at large B use tb = B//2 (multiple of 128)
                           # so "parallel" shards across both TensorCores.
    t_tiled, cc_tiled, sel_tile, cc_np, steps_np = build_quadrature_constants(
        nb_steps, tb, S_PAD)

    # Deterministic synthetic parameters for IntegrandNN_v1 (1 -> 32 -> 32 -> 1),
    # stored in kernel-friendly (column / transposed) layouts.
    key = jax.random.PRNGKey(0)
    k_x, k1, k2, k3, kb1, kb2, kb3 = jax.random.split(key, 7)
    w1_col = jax.random.normal(k1, (H1, 1), jnp.float32)                        # W1^T col
    b1_col = jax.random.normal(kb1, (H1, 1), jnp.float32) * 0.1
    w2t = jax.random.normal(k2, (H2, H1), jnp.float32) * (1.0 / math.sqrt(H1))  # W2^T
    b2_col = jax.random.normal(kb2, (H2, 1), jnp.float32) * 0.1
    w3_row = jax.random.normal(k3, (1, H2), jnp.float32) * (1.0 / math.sqrt(H2))
    b3 = jax.random.normal(kb3, (1,), jnp.float32) * 0.1

    # Input: (B, 1) as implied by IntegrandNN(in_d=1).
    x = jax.random.normal(k_x, (B, 1), jnp.float32) * 2.0

    out = monotonic_nn_forward(x, t_tiled, cc_tiled, sel_tile, w1_col, b1_col,
                               w2t, b2_col, w3_row, b3, s_pad=S_PAD, tb=tb)
    out = jax.block_until_ready(out)

    ref = reference_forward(x, jnp.asarray(steps_np), jnp.asarray(cc_np),
                            w1_col.T, b1_col.T, w2t.T, b2_col.T, w3_row.T,
                            b3.reshape(1, 1))
    ref = jax.block_until_ready(ref)

    assert out.shape == (B, 1) and out.dtype == jnp.float32
    np.testing.assert_allclose(np.asarray(out), np.asarray(ref),
                               rtol=1e-3, atol=1e-3)
    print("KERNEL_OK")
</pallas_src>

<mosaic_0001>
module attributes {stable_mosaic.version = 11 : i64} {
  func.func @monotonic_kernel(%arg0: i32, %arg1: memref<1x16xf32, #tpu.memory_space<vmem>>, %arg2: memref<1x896xf32, #tpu.memory_space<vmem>>, %arg3: memref<1x896xf32, #tpu.memory_space<vmem>>, %arg4: memref<1x896xf32, #tpu.memory_space<vmem>>, %arg5: memref<32x1xf32, #tpu.memory_space<vmem>>, %arg6: memref<32x1xf32, #tpu.memory_space<vmem>>, %arg7: memref<32x32xf32, #tpu.memory_space<vmem>>, %arg8: memref<32x1xf32, #tpu.memory_space<vmem>>, %arg9: memref<1x32xf32, #tpu.memory_space<vmem>>, %arg10: memref<1xf32, #tpu.memory_space<smem>>, %arg11: memref<896x16xf32, #tpu.memory_space<vmem>>, %arg12: memref<1x16xf32, #tpu.memory_space<vmem>>) attributes {dimension_semantics = [#tpu.dimension_semantics<parallel>], iteration_bounds = array<i64: 1>, scalar_prefetch = 0 : i64, scratch_operands = 0 : i64, tpu.core_type = #tpu.core_type<tc>, window_params = [{transform_indices = @transform_0, window_bounds = array<i64: 1, 16>}, {transform_indices = @transform_1, window_bounds = array<i64: 1, 896>}, {pipeline_mode = #tpu.pipeline_mode<synchronous>, transform_indices = @transform_2, window_bounds = array<i64: 1, 896>}, {pipeline_mode = #tpu.pipeline_mode<synchronous>, transform_indices = @transform_3, window_bounds = array<i64: 1, 896>}, {pipeline_mode = #tpu.pipeline_mode<synchronous>, transform_indices = @transform_4, window_bounds = array<i64: 32, 1>}, {pipeline_mode = #tpu.pipeline_mode<synchronous>, transform_indices = @transform_5, window_bounds = array<i64: 32, 1>}, {pipeline_mode = #tpu.pipeline_mode<synchronous>, transform_indices = @transform_6, window_bounds = array<i64: 32, 32>}, {pipeline_mode = #tpu.pipeline_mode<synchronous>, transform_indices = @transform_7, window_bounds = array<i64: 32, 1>}, {pipeline_mode = #tpu.pipeline_mode<synchronous>, transform_indices = @transform_8, window_bounds = array<i64: 1, 32>}, {transform_indices = @transform_9, window_bounds = array<i64: 1>}, {pipeline_mode = #tpu.pipeline_mode<synchronous>, transform_indices = @transform_10, window_bounds = array<i64: 896, 16>}, {transform_indices = @transform_11, window_bounds = array<i64: 1, 16>}]} {
    %c0 = arith.constant 0 : index
    %c0_0 = arith.constant 0 : index
    %0 = vector.load %arg2[%c0, %c0_0] : memref<1x896xf32, #tpu.memory_space<vmem>>, vector<1x896xf32>
    %c0_1 = arith.constant 0 : index
    %c0_2 = arith.constant 0 : index
    %1 = vector.load %arg3[%c0_1, %c0_2] : memref<1x896xf32, #tpu.memory_space<vmem>>, vector<1x896xf32>
    %2 = arith.mulf %0, %1 : vector<1x896xf32>
    %c0_3 = arith.constant 0 : index
    %c0_4 = arith.constant 0 : index
    %3 = vector.load %arg5[%c0_3, %c0_4] : memref<32x1xf32, #tpu.memory_space<vmem>>, vector<32x1xf32>
    %4 = vector.broadcast %3 : vector<32x1xf32> to vector<32x896xf32>
    %5 = vector.broadcast %2 : vector<1x896xf32> to vector<32x896xf32>
    %6 = arith.mulf %4, %5 : vector<32x896xf32>
    %c0_5 = arith.constant 0 : index
    %c0_6 = arith.constant 0 : index
    %7 = vector.load %arg6[%c0_5, %c0_6] : memref<32x1xf32, #tpu.memory_space<vmem>>, vector<32x1xf32>
    %8 = vector.broadcast %7 : vector<32x1xf32> to vector<32x896xf32>
    %9 = arith.addf %6, %8 : vector<32x896xf32>
    %cst = arith.constant 0.000000e+00 : f32
    %10 = vector.broadcast %cst : f32 to vector<32x896xf32>
    %11 = arith.maximumf %9, %10 : vector<32x896xf32>
    %c0_7 = arith.constant 0 : index
    %c0_8 = arith.constant 0 : index
    %12 = vector.load %arg7[%c0_7, %c0_8] : memref<32x32xf32, #tpu.memory_space<vmem>>, vector<32x32xf32>
    %cst_9 = arith.constant dense<0.000000e+00> : vector<32x896xf32>
    %13 = tpu.matmul %12, %11, %cst_9 {dimension_numbers = #tpu.dot_dimension_numbers<[1], [0], [0], [1], [0, 0, 1, 1], [], []>} : vector<32x32xf32>, vector<32x896xf32>, vector<32x896xf32> -> vector<32x896xf32>
    %c0_10 = arith.constant 0 : index
    %c0_11 = arith.constant 0 : index
    %14 = vector.load %arg8[%c0_10, %c0_11] : memref<32x1xf32, #tpu.memory_space<vmem>>, vector<32x1xf32>
    %15 = vector.broadcast %14 : vector<32x1xf32> to vector<32x896xf32>
    %16 = arith.addf %13, %15 : vector<32x896xf32>
    %cst_12 = arith.constant 0.000000e+00 : f32
    %17 = vector.broadcast %cst_12 : f32 to vector<32x896xf32>
    %18 = arith.maximumf %16, %17 : vector<32x896xf32>
    %c0_13 = arith.constant 0 : index
    %c0_14 = arith.constant 0 : index
    %19 = vector.load %arg9[%c0_13, %c0_14] : memref<1x32xf32, #tpu.memory_space<vmem>>, vector<1x32xf32>
    %cst_15 = arith.constant dense<0.000000e+00> : vector<1x896xf32>
    %20 = tpu.matmul %19, %18, %cst_15 {dimension_numbers = #tpu.dot_dimension_numbers<[1], [0], [0], [1], [0, 0, 1, 1], [], []>} : vector<1x32xf32>, vector<32x896xf32>, vector<1x896xf32> -> vector<1x896xf32>
    %c0_16 = arith.constant 0 : index
    %21 = memref.load %arg10[%c0_16] : memref<1xf32, #tpu.memory_space<smem>>
    %22 = vector.broadcast %21 : f32 to vector<1x896xf32>
    %23 = arith.addf %20, %22 : vector<1x896xf32>
    %cst_17 = arith.constant 0.000000e+00 : f32
    %24 = vector.broadcast %cst_17 : f32 to vector<1x896xf32>
    %25 = arith.cmpf ogt, %23, %24 : vector<1x896xf32>
    %26 = math.exp %23 : vector<1x896xf32>
    %cst_18 = arith.constant 1.000000e+00 : f32
    %27 = vector.broadcast %cst_18 : f32 to vector<1x896xf32>
    %28 = arith.subf %26, %27 : vector<1x896xf32>
    %29 = arith.select %25, %23, %28 : vector<1x896xi1>, vector<1x896xf32>
    %cst_19 = arith.constant 1.000000e+00 : f32
    %30 = vector.broadcast %cst_19 : f32 to vector<1x896xf32>
    %31 = arith.addf %29, %30 : vector<1x896xf32>
    %c0_20 = arith.constant 0 : index
    %c0_21 = arith.constant 0 : index
    %32 = vector.load %arg4[%c0_20, %c0_21] : memref<1x896xf32, #tpu.memory_space<vmem>>, vector<1x896xf32>
    %33 = arith.mulf %31, %32 : vector<1x896xf32>
    %c0_22 = arith.constant 0 : index
    %c0_23 = arith.constant 0 : index
    %34 = vector.load %arg11[%c0_22, %c0_23] : memref<896x16xf32, #tpu.memory_space<vmem>>, vector<896x16xf32>
    %cst_24 = arith.constant dense<0.000000e+00> : vector<1x16xf32>
    %35 = tpu.matmul %33, %34, %cst_24 {dimension_numbers = #tpu.dot_dimension_numbers<[1], [0], [0], [1], [0, 0, 1, 1], [], []>} : vector<1x896xf32>, vector<896x16xf32>, vector<1x16xf32> -> vector<1x16xf32>
    %c0_25 = arith.constant 0 : index
    %c0_26 = arith.constant 0 : index
    %36 = vector.load %arg1[%c0_25, %c0_26] : memref<1x16xf32, #tpu.memory_space<vmem>>, vector<1x16xf32>
    %37 = arith.mulf %35, %36 : vector<1x16xf32>
    %c0_27 = arith.constant 0 : index
    %c0_28 = arith.constant 0 : index
    %38 = vector.load %arg12[%c0_27, %c0_28] : memref<1x16xf32, #tpu.memory_space<vmem>>, vector<1x16xf32>
    tpu.vector_store %arg12[%c0_27, %c0_28], %37 {strides = array<i32>} : memref<1x16xf32, #tpu.memory_space<vmem>>, vector<1x16xf32>,
    return
  }
  func.func @transform_0(%arg0: i32) -> (i32, i32) {
    %c0_i32 = arith.constant 0 : i32
    %c0_i32_0 = arith.constant 0 : i32
    return %c0_i32, %arg0 : i32, i32
  }
  func.func @transform_1(%arg0: i32) -> (i32, i32) {
    %c0_i32 = arith.constant 0 : i32
    %c0_i32_0 = arith.constant 0 : i32
    return %c0_i32, %arg0 : i32, i32
  }
  func.func @transform_2(%arg0: i32) -> (i32, i32) {
    %c0_i32 = arith.constant 0 : i32
    %c0_i32_0 = arith.constant 0 : i32
    %c0_i32_1 = arith.constant 0 : i32
    return %c0_i32, %c0_i32_0 : i32, i32
  }
  func.func @transform_3(%arg0: i32) -> (i32, i32) {
    %c0_i32 = arith.constant 0 : i32
    %c0_i32_0 = arith.constant 0 : i32
    %c0_i32_1 = arith.constant 0 : i32
    return %c0_i32, %c0_i32_0 : i32, i32
  }
  func.func @transform_4(%arg0: i32) -> (i32, i32) {
    %c0_i32 = arith.constant 0 : i32
    %c0_i32_0 = arith.constant 0 : i32
    %c0_i32_1 = arith.constant 0 : i32
    return %c0_i32, %c0_i32_0 : i32, i32
  }
  func.func @transform_5(%arg0: i32) -> (i32, i32) {
    %c0_i32 = arith.constant 0 : i32
    %c0_i32_0 = arith.constant 0 : i32
    %c0_i32_1 = arith.constant 0 : i32
    return %c0_i32, %c0_i32_0 : i32, i32
  }
  func.func @transform_6(%arg0: i32) -> (i32, i32) {
    %c0_i32 = arith.constant 0 : i32
    %c0_i32_0 = arith.constant 0 : i32
    %c0_i32_1 = arith.constant 0 : i32
    return %c0_i32, %c0_i32_0 : i32, i32
  }
  func.func @transform_7(%arg0: i32) -> (i32, i32) {
    %c0_i32 = arith.constant 0 : i32
    %c0_i32_0 = arith.constant 0 : i32
    %c0_i32_1 = arith.constant 0 : i32
    return %c0_i32, %c0_i32_0 : i32, i32
  }
  func.func @transform_8(%arg0: i32) -> (i32, i32) {
    %c0_i32 = arith.constant 0 : i32
    %c0_i32_0 = arith.constant 0 : i32
    %c0_i32_1 = arith.constant 0 : i32
    return %c0_i32, %c0_i32_0 : i32, i32
  }
  func.func @transform_9(%arg0: i32) -> i32 {
    %c0_i32 = arith.constant 0 : i32
    %c0_i32_0 = arith.constant 0 : i32
    return %c0_i32 : i32
  }
  func.func @transform_10(%arg0: i32) -> (i32, i32) {
    %c0_i32 = arith.constant 0 : i32
    %c0_i32_0 = arith.constant 0 : i32
    %c0_i32_1 = arith.constant 0 : i32
    return %c0_i32, %c0_i32_0 : i32, i32
  }
  func.func @transform_11(%arg0: i32) -> (i32, i32) {
    %c0_i32 = arith.constant 0 : i32
    %c0_i32_0 = arith.constant 0 : i32
    return %c0_i32, %arg0 : i32, i32
  }
}

</mosaic_0001>

<bundles_post_ra>
// kernel: tpu_custom_call.1
= control target key start
LH: loop header
LB: loop body
LE: loop exit
PB: predicated region body
PF: predicated region fallthrough
CT: control target
= control target key end

     0   :  { %v1866_v2 = vmov 0   ;;  %s2587_s0 = inlined_call_operand.vmem [shape: f32[1,16], index: 0, kind: input, shape index: {}]   ;;  %s2588_s1 = inlined_call_operand.vmem [shape: f32[1,896], index: 1, kind: input, shape index: {}]   ;;  %s2589_s2 = inlined_call_operand.vmem [shape: f32[1,896], index: 2, kind: input, shape index: {}]   ;;  %s2590_s3 = inlined_call_operand.vmem [shape: f32[1,896], index: 3, kind: input, shape index: {}]   ;;  %s2591_s4 = inlined_call_operand.vmem [shape: f32[32,1], index: 4, kind: input, shape index: {}]   ;;  %s2592_s5 = inlined_call_operand.vmem [shape: f32[32,1], index: 5, kind: input, shape index: {}]   ;;  %s2593_s6 = inlined_call_operand.vmem [shape: f32[32,32], index: 6, kind: input, shape index: {}]   ;;  %s2594_s7 = inlined_call_operand.vmem [shape: f32[32,1], index: 7, kind: input, shape index: {}]   ;;  %s2595_s8 = inlined_call_operand.vmem [shape: f32[1,32], index: 8, kind: input, shape index: {}]   ;;  %s2596_s9 = inlined_call_operand.<no memory space> [shape: f32[1], index: 9, kind: input, shape index: {}]   ;;  %s2597_s10 = inlined_call_operand.vmem [shape: f32[896,16], index: 10, kind: input, shape index: {}]   ;;  %s2598_s11 = inlined_call_operand.hbm [shape: f32[1,16], index: 11, kind: output, shape index: {}]  }
   0x1   :  { %v131_v0 = vld [vmem:[%s2592_s5] sm:$0xff]  ;;  %1827 = vset.pattern.permute.xlu1 %v1866_v2  ;;  %1826 = vset.pattern.permute.xlu0 %v1866_v2  ;;  %v132_v3 = vld [vmem:[%s2592_s5 + $0x8] sm:$0xff] }
   0x2   :  { %v43_v1 = vld [vmem:[%s2591_s4] sm:$0xff]  ;;  %137 = vperm.xlu1 %1827, %v131_v0   ;;  %v44_v4 = vld [vmem:[%s2591_s4 + $0x8] sm:$0xff] }
   0x3   :  { %49 = vperm.xlu0 %1826, %v43_v1  }
   0x4   :  { %17 = vsyncpa [#allocation4], 0  ;;  %v46_v5 = vld [vmem:[%s2591_s4 + $0x18] sm:$0xff]  ;;  %v45_v6 = vld [vmem:[%s2591_s4 + $0x10] sm:$0xff]  ;;  %v1867_v13 = vmov 0.0   ;;  %v68_v14 = vlaneseq  ;;  %vm239_vm0 = vcmask 261120  }
   0x5   :  { %v134_v7 = vld [vmem:[%s2592_s5 + $0x18] sm:$0xff]  ;;  %v133_v8 = vld [vmem:[%s2592_s5 + $0x10] sm:$0xff]  ;;  %v216_v9 = vld [vmem:[%s2594_s7 + $0x8] sm:$0xff]  ;;  %316 = vmatprep.mubr.f32.mxu0 %v1867_v13  ;;  %405 = vmatprep.mubr.f32.mxu1 %v1867_v13  ;;  %vm1869_vm1 = vmmov 0   ;;  %s1870_s21 = smov [#allocation3]   ;;  %vm1401_vm9 = vcmask 122880  }
   0x6   :  { %142 = vperm.xlu1 %1827, %v132_v3   ;;  %v215_v10 = vld [vmem:[%s2594_s7] sm:$0xff]  ;;  %v218_v11 = vld [vmem:[%s2594_s7 + $0x18] sm:$0xff]  ;;  %v217_v12 = vld [vmem:[%s2594_s7 + $0x10] sm:$0xff]  ;;  %v1969_v15 = vshrl.u32 %v68_v14, 7  ;;  %s1409_s22 = sshll.u32 %s1870_s21, 4  ;;  %s1410_s22 = int_to_ptr.vmem [resolvable:$true] %s1409_s22 }
   0x7   :  { %54 = vperm.xlu0 %1826, %v44_v4   ;;  %v40_v16 = vld [vmem:[%s2588_s1] sm:$0xff]  ;;  %s1842_s23 = scalar_lea.vmem %s1410_s22, 16  ;;  %s1846_s1 = scalar_lea.vmem %s1410_s22, 32 }
   0x8   :  { %v41_v17 = vld [vmem:[%s2589_s2] sm:$0xff]  ;;  %v74_v18 = vsub.s32 1, %v1969_v15  ;;  %v82_v20 = vsub.s32 3, %v1969_v15  ;;  %v70_v21 = vsub.s32 0, %v1969_v15  ;;  %v78_v22 = vsub.s32 2, %v1969_v15  ;;  %p1843_p0 = scmp.ne.s32.totalorder %s1410_s22, %s1842_s23  ;;  %p1847_p1 = scmp.lt.s32.totalorder %s1410_s22, %s1410_s22 }
   0x9   :  { %v42_v19 = vmul.f32 %v41_v17, %v40_v16  ;;  %v90_v23 = vsub.s32 5, %v1969_v15  ;;  %v94_v24 = vsub.s32 6, %v1969_v15  ;;  %v86_v25 = vsub.s32 4, %v1969_v15  ;;  %p1848_p2 = scmp.lt.s32.totalorder %s1846_s1, %s1842_s23 }
   0xa   :  { %64 = vperm.xlu1 %1827, %v46_v5  }
   0xb   :  { %59 = vperm.xlu0 %1826, %v45_v6   ;;  %v75_v26 = vrot.slane %v42_v19, %v74_v18  ;;  %v83_v27 = vrot.slane %v42_v19, %v82_v20  ;;  %v71_v28 = vrot.slane %v42_v19, %v70_v21  ;;  %v79_v29 = vrot.slane %v42_v19, %v78_v22  ;;  %p1849_p3 = por %p1848_p2, %p1847_p1 }
   0xc   :  { %v1994_v30 = vrot.slane %v42_v19, %v90_v23  ;;  %v1998_v31 = vrot.slane %v42_v19, %v94_v24  ;;  %v2002_v32 = vrot.slane %v42_v19, %v86_v25 }
   0xd   :  { %p1850_p4 = pnand %p1849_p3, %p1843_p0 }
   0xe   :  { %152 = vperm.xlu1 %1827, %v134_v7  }
   0xf   :  { %147 = vperm.xlu0 %1826, %v133_v8  }
  0x12   :  { %226 = vperm.xlu1 %1827, %v216_v9  }
  0x13   :  { %221 = vperm.xlu0 %1826, %v215_v10  }
  0x16   :  { %236 = vperm.xlu1 %1827, %v218_v11  }
  0x17   :  { %231 = vperm.xlu0 %1826, %v217_v12  }
  0x81   :  { %v138_v33 = vpop.permute.xlu1 %137 }
  0x82   :  { %v50_v34 = vpop.permute.xlu0 %49 }
  0x83   :  { %v104_v35 = vmul.f32 %v75_v26, %v50_v34  ;;  %v106_v36 = vmul.f32 %v83_v27, %v50_v34  ;;  %v103_v37 = vmul.f32 %v71_v28, %v50_v34  ;;  %v105_v38 = vmul.f32 %v79_v29, %v50_v34 }
  0x84   :  { %v108_v39 = vmul.f32 %v1994_v30, %v50_v34  ;;  %v109_v40 = vmul.f32 %v1998_v31, %v50_v34  ;;  %v107_v41 = vmul.f32 %v2002_v32, %v50_v34 }
  0x85   :  { %v156_v42 = vadd.f32 %v138_v33, %v104_v35  ;;  %v158_v43 = vadd.f32 %v138_v33, %v106_v36  ;;  %v155_v44 = vadd.f32 %v138_v33, %v103_v37  ;;  %v157_v45 = vadd.f32 %v138_v33, %v105_v38  ;;  %v2007_v46 = vpop.permute.xlu1 %142 }
  0x86   :  { %v2009_v47 = vpop.permute.xlu0 %54  ;;  %v2011_v48 = vadd.f32 %v138_v33, %v108_v39  ;;  %v2015_v51 = vadd.f32 %v138_v33, %v109_v40  ;;  %v2017_v52 = vadd.f32 %v138_v33, %v107_v41 }
  0x87   :  { %v111_v49 = vmul.f32 %v75_v26, %v2009_v47  ;;  %v113_v50 = vmul.f32 %v83_v27, %v2009_v47  ;;  %v184_v53 = vmax.f32 %v156_v42, 0.0  ;;  %v186_v54 = vmax.f32 %v158_v43, 0.0 }
  0x88   :  { %v110_v55 = vmul.f32 %v71_v28, %v2009_v47  ;;  %v112_v56 = vmul.f32 %v79_v29, %v2009_v47  ;;  %v183_v59 = vmax.f32 %v155_v44, 0.0  ;;  %v185_v60 = vmax.f32 %v157_v45, 0.0 }
  0x89   :  { %v163_v57 = vadd.f32 %v2007_v46, %v111_v49  ;;  %v165_v58 = vadd.f32 %v2007_v46, %v113_v50  ;;  %v2023_v61 = vpop.permute.xlu1 %64  ;;  %v115_v1 = vmul.f32 %v1994_v30, %v2009_v47  ;;  %v116_v2 = vmul.f32 %v1998_v31, %v2009_v47 }
  0x8a   :  { %v2025_v62 = vpop.permute.xlu0 %59  ;;  %v162_v63 = vadd.f32 %v2007_v46, %v110_v55  ;;  %v164_v0 = vadd.f32 %v2007_v46, %v112_v56  ;;  %v125_v6 = vmul.f32 %v75_v26, %v2023_v61  ;;  %v127_v10 = vmul.f32 %v83_v27, %v2023_v61 }
  0x8b   :  { %v191_v3 = vmax.f32 %v163_v57, 0.0  ;;  %v193_v4 = vmax.f32 %v165_v58, 0.0  ;;  %v118_v5 = vmul.f32 %v75_v26, %v2025_v62  ;;  %v120_v9 = vmul.f32 %v83_v27, %v2025_v62 }
  0x8c   :  { %v190_v7 = vmax.f32 %v162_v63, 0.0  ;;  %v192_v8 = vmax.f32 %v164_v0, 0.0  ;;  %v117_v14 = vmul.f32 %v71_v28, %v2025_v62  ;;  %v124_v16 = vmul.f32 %v71_v28, %v2023_v61 }
  0x8d   :  { %v1639_v11 = vpack.c.bf16 %v191_v3, %v184_v53  ;;  %v1647_v12 = vpack.c.bf16 %v193_v4, %v186_v54  ;;  %v2039_v17 = vpop.permute.xlu1 %152  ;;  %v119_v26 = vmul.f32 %v79_v29, %v2025_v62  ;;  %v126_v35 = vmul.f32 %v79_v29, %v2023_v61 }
  0x8e   :  { %v2041_v19 = vpop.permute.xlu0 %147  ;;  %v1641_v33 = vpack.c.bf16 %v190_v7, %v183_v59  ;;  %v1649_v34 = vpack.c.bf16 %v192_v8, %v185_v60  ;;  %v177_v36 = vadd.f32 %v2039_v17, %v125_v6  ;;  %v188_v28 = vmax.f32 %v2011_v48, 0.0  ;;  %v211_v7 = vld [vmem:[%s2593_s6] sm:$0xff] }
  0x8f   :  { %1640 = vmatprep.subr.bf16.mxu0 %v1639_v11  ;;  %1648 = vmatprep.subr.bf16.mxu1 %v1647_v12  ;;  %v170_v27 = vadd.f32 %v2041_v19, %v118_v5  ;;  %v172_v37 = vadd.f32 %v2041_v19, %v120_v9  ;;  %v179_v38 = vadd.f32 %v2039_v17, %v127_v10  ;;  %v189_v29 = vmax.f32 %v2015_v51, 0.0 }
  0x90   :  { %1642 = vmatpush1.bf16.msra.mxu0 %v1641_v33  ;;  %1650 = vmatpush1.bf16.msra.mxu1 %v1649_v34  ;;  %v169_v39 = vadd.f32 %v2041_v19, %v117_v14  ;;  %v176_v40 = vadd.f32 %v2039_v17, %v124_v16  ;;  %v205_v42 = vmax.f32 %v177_v36, 0.0  ;;  %v171_v44 = vadd.f32 %v2041_v19, %v119_v26 }
  0x91   :  { %v198_v41 = vmax.f32 %v170_v27, 0.0  ;;  %v200_v43 = vmax.f32 %v172_v37, 0.0  ;;  %v207_v45 = vmax.f32 %v179_v38, 0.0  ;;  %v178_v48 = vadd.f32 %v2039_v17, %v126_v35  ;;  %v214_v37 = vld [vmem:[%s2593_s6 + $0x18] sm:$0xff] }
  0x92   :  { %v197_v49 = vmax.f32 %v169_v39, 0.0  ;;  %v204_v50 = vmax.f32 %v176_v40, 0.0  ;;  %v199_v54 = vmax.f32 %v171_v44, 0.0  ;;  %v167_v55 = vadd.f32 %v2007_v46, %v115_v1  ;;  %v2119_v40 = vpop.permute.xlu0 %221 }
  0x93   :  { %v1643_v53 = vpack.c.bf16 %v205_v42, %v198_v41  ;;  %v168_v56 = vadd.f32 %v2007_v46, %v116_v2  ;;  %v1651_v57 = vpack.c.bf16 %v207_v45, %v200_v43  ;;  %v206_v59 = vmax.f32 %v178_v48, 0.0  ;;  %v2122_v42 = vpop.permute.xlu1 %226 }
  0x94   :  { %v1645_v58 = vpack.c.bf16 %v204_v50, %v197_v49  ;;  %v114_v51 = vmul.f32 %v2002_v32, %v2009_v47  ;;  %v195_v60 = vmax.f32 %v167_v55, 0.0  ;;  %v122_v0 = vmul.f32 %v1994_v30, %v2025_v62 }
  0x95   :  { %1644 = vmatprep.subr.bf16.mxu0 %v1643_v53  ;;  %v196_v63 = vmax.f32 %v168_v56, 0.0  ;;  %v129_v3 = vmul.f32 %v1994_v30, %v2023_v61  ;;  %1652 = vmatprep.subr.bf16.mxu1 %v1651_v57  ;;  %v1653_v1 = vpack.c.bf16 %v206_v59, %v199_v54  ;;  %v187_v4 = vmax.f32 %v2017_v52, 0.0 }
  0x96   :  { %1646 = vmatpush1.bf16.msra.mxu0 %v1645_v58  ;;  %v166_v2 = vadd.f32 %v2007_v46, %v114_v51  ;;  %v123_v5 = vmul.f32 %v1998_v31, %v2025_v62  ;;  %v1655_v47 = vpack.c.bf16 %v195_v60, %v188_v28  ;;  %v174_v8 = vadd.f32 %v2041_v19, %v122_v0 }
  0x97   :  { %v1663_v6 = vpack.c.bf16 %v196_v63, %v189_v29  ;;  %v181_v30 = vadd.f32 %v2039_v17, %v129_v3  ;;  %1654 = vmatpush1.bf16.msra.mxu1 %v1653_v1  ;;  %v130_v46 = vmul.f32 %v1998_v31, %v2023_v61  ;;  %v121_v10 = vmul.f32 %v2002_v32, %v2025_v62  ;;  %v212_v62 = vld [vmem:[%s2593_s6 + $0x8] sm:$0xff] }
  0x98   :  { %v194_v9 = vmax.f32 %v166_v2, 0.0  ;;  %v175_v52 = vadd.f32 %v2041_v19, %v123_v5  ;;  %1656 = vmatprep.subr.bf16.mxu0 %v1655_v47  ;;  %v202_v11 = vmax.f32 %v174_v8, 0.0  ;;  %v128_v14 = vmul.f32 %v2002_v32, %v2023_v61 }
  0x99   :  { %1664 = vmatprep.subr.bf16.mxu1 %v1663_v6  ;;  %v209_v12 = vmax.f32 %v181_v30, 0.0  ;;  %1417 = vmatmul.mubr.msk.f32.vlgmr.msra.gmra.mrb[0].mxu0 %vm239_vm0, %v211_v7  ;;  %v182_v33 = vadd.f32 %v2039_v17, %v130_v46  ;;  %v173_v31 = vadd.f32 %v2041_v19, %v121_v10 }
  0x9a   :  { %v1657_v16 = vpack.c.bf16 %v194_v9, %v187_v4  ;;  %v203_v34 = vmax.f32 %v175_v52, 0.0  ;;  %1421 = vmatmul.mubr.msk.f32.vlgmr.msra.gmra.mrb[0].mxu1 %vm239_vm0, %v211_v7  ;;  %322 = vmatprep.mubr.f32.mxu0 %v1867_v13  ;;  %v180_v35 = vadd.f32 %v2039_v17, %v128_v14  ;;  %v213_v17 = vld [vmem:[%s2593_s6 + $0x10] sm:$0xff]  ;;  %v2134_v52 = vpop.permute.xlu1 %236 }
  0x9b   :  { %v1659_v26 = vpack.c.bf16 %v209_v12, %v202_v11  ;;  %1666 = vmatpush3.bf16.msra.mxu1 %v1663_v6  ;;  %v210_v32 = vmax.f32 %v182_v33, 0.0  ;;  %v201_v61 = vmax.f32 %v173_v31, 0.0  ;;  %411 = vmatprep.mubr.f32.mxu1 %v1867_v13  ;;  %v2131_v6 = vpop.permute.xlu0 %231 }
  0x9c   :  { %1658 = vmatpush1.bf16.msra.mxu0 %v1657_v16  ;;  %v208_v27 = vmax.f32 %v180_v35, 0.0 }
  0x9d   :  { %1660 = vmatprep.subr.bf16.mxu0 %v1659_v26  ;;  %v1667_v19 = vpack.c.bf16 %v210_v32, %v203_v34  ;;  %1418 = vmatmul.mubr.msk.f32.gmra.mrb[2].mxu0 %vm239_vm0, %v212_v62 }
  0x9e   :  { %1422 = vmatmul.mubr.msk.f32.gmra.mrb[2].mxu1 %vm239_vm0, %v212_v62  ;;  %v1661_v36 = vpack.c.bf16 %v208_v27, %v201_v61  ;;  %328 = vmatprep.mubr.f32.mxu0 %v1867_v13 }
  0x9f   :  { %1668 = vmatprep.subr.bf16.mxu1 %v1667_v19  ;;  %417 = vmatprep.mubr.f32.mxu1 %v1867_v13 }
  0xa0   :  { %1662 = vmatpush1.bf16.msra.mxu0 %v1661_v36  ;;  %1670 = vmatpush3.bf16.msra.mxu1 %v1667_v19 }
  0xa1   :  { %1419 = vmatmul.mubr.msk.f32.gmra.mrb[4].mxu0 %vm239_vm0, %v213_v17 }
  0xa2   :  { %1423 = vmatmul.mubr.msk.f32.gmra.mrb[4].mxu1 %vm239_vm0, %v213_v17  ;;  %334 = vmatprep.mubr.f32.mxu0 %v1867_v13 }
  0xa3   :  { %423 = vmatprep.mubr.f32.mxu1 %v1867_v13 }
  0xa5   :  { %1420 = vmatmul.mubr.msk.f32.gmra.mrb[6].mxu0 %vm239_vm0, %v214_v37 }
  0xa6   :  { %1424 = vmatmul.mubr.msk.f32.gmra.mrb[6].mxu1 %vm239_vm0, %v214_v37  ;;  %494 = vmatprep.mubr.f32.mxu0 %v1867_v13 }
  0xa7   :  { %1587 = vmatprep.mubr.msk.f32.mxu1 %vm239_vm0, %v211_v7 }
  0xa9   :  { %1425 = vmatmul.mubr.msk.f32.vlgmr.msra.gmra.mrb[8].mxu0 %vm239_vm0, %v211_v7 }
  0xaa   :  { %1588 = vmatmul.mubr.msk.f32.vlgmr.msra.gmra.mrb[8].mxu1 %vm239_vm0, %v212_v62  ;;  %500 = vmatprep.mubr.f32.mxu0 %v1867_v13 }
  0xab   :  { %1590 = vmatprep.mubr.msk.f32.mxu1 %vm239_vm0, %v213_v17 }
  0xad   :  { %1426 = vmatmul.mubr.msk.f32.gmra.mrb[10].mxu0 %vm239_vm0, %v212_v62 }
  0xae   :  { %1591 = vmatmul.mubr.msk.f32.gmra.mrb[10].mxu1 %vm239_vm0, %v214_v37  ;;  %506 = vmatprep.mubr.f32.mxu0 %v1867_v13 }
  0xaf   :  { %702 = vmatprep.mubr.f32.mxu1 %v1867_v13 }
  0xb1   :  { %1427 = vmatmul.mubr.msk.f32.gmra.mrb[12].mxu0 %vm239_vm0, %v213_v17 }
  0xb2   :  { %512 = vmatprep.mubr.f32.mxu0 %v1867_v13 }
  0xb5   :  { %1428 = vmatmul.mubr.msk.f32.gmra.mrb[14].mxu0 %vm239_vm0, %v214_v37 }
  0xb6   :  { %773 = vmatprep.mubr.f32.mxu0 %v1867_v13 }
 0x16c   :  { %v318_v28 = vpop.f32.mrb[0].mxu0 }
 0x16d   :  { %v407_v38 = vpop.f32.mrb[0].mxu1  ;;  %v320_v39 = vpop.f32.mrb[1].mxu0  ;;  %v319_v41 = vadd.f32 %v318_v28, %v2119_v40 }
 0x16e   :  { %v409_v29 = vpop.f32.mrb[1].mxu1  ;;  %v408_v43 = vadd.f32 %v407_v38, %v2119_v40  ;;  %v321_v44 = vadd.f32 %v320_v39, %v2119_v40 }
 0x16f   :  { %v410_v49 = vadd.f32 %v409_v29, %v2119_v40  ;;  %v604_v57 = vmax.f32 %v319_v41, 0.0 }
 0x170   :  { %v324_v45 = vpop.f32.mrb[2].mxu0  ;;  %v606_v51 = vmax.f32 %v408_v43, 0.0  ;;  %v605_v60 = vmax.f32 %v321_v44, 0.0 }
 0x171   :  { %v325_v50 = vadd.f32 %v324_v45, %v2122_v42  ;;  %v413_v48 = vpop.f32.mrb[2].mxu1  ;;  %v326_v53 = vpop.f32.mrb[3].mxu0  ;;  %v607_v1 = vmax.f32 %v410_v49, 0.0 }
 0x172   :  { %v414_v54 = vadd.f32 %v413_v48, %v2122_v42  ;;  %v327_v55 = vadd.f32 %v326_v53, %v2122_v42  ;;  %v415_v56 = vpop.f32.mrb[3].mxu1 }
 0x173   :  { %v611_v58 = vmax.f32 %v325_v50, 0.0  ;;  %v416_v59 = vadd.f32 %v415_v56, %v2122_v42 }
 0x174   :  { %v613_v63 = vmax.f32 %v414_v54, 0.0  ;;  %v612_v0 = vmax.f32 %v327_v55, 0.0  ;;  %v330_v3 = vpop.f32.mrb[4].mxu0 }
 0x175   :  { %v1673_v2 = vpack.c.bf16 %v611_v58, %v604_v57  ;;  %v614_v4 = vmax.f32 %v416_v59, 0.0  ;;  %v419_v5 = vpop.f32.mrb[4].mxu1  ;;  %v332_v47 = vpop.f32.mrb[5].mxu0  ;;  %v331_v46 = vadd.f32 %v330_v3, %v2131_v6 }
 0x176   :  { %v1681_v7 = vpack.c.bf16 %v613_v63, %v606_v51  ;;  %v1671_v8 = vpack.c.bf16 %v612_v0, %v605_v60  ;;  %v421_v30 = vpop.f32.mrb[5].mxu1  ;;  %v420_v10 = vadd.f32 %v419_v5, %v2131_v6  ;;  %v333_v11 = vadd.f32 %v332_v47, %v2131_v6  ;;  %v2151_v60 = vld [vmem:[%s2595_s8] sm:$0x1] }
 0x177   :  { %v1679_v9 = vpack.c.bf16 %v614_v4, %v607_v1  ;;  %v422_v14 = vadd.f32 %v421_v30, %v2131_v6  ;;  %v618_v35 = vmax.f32 %v331_v46, 0.0  ;;  %v1868_v5 = vmov 0.0|0.0  }
 0x178   :  { %v336_v12 = vpop.f32.mrb[6].mxu0  ;;  %1672 = vmatprep.subr.bf16.mxu1 %v1671_v8  ;;  %v620_v27 = vmax.f32 %v420_v10, 0.0  ;;  %v619_v19 = vmax.f32 %v333_v11, 0.0 }
 0x179   :  { %v337_v16 = vadd.f32 %v336_v12, %v2134_v52  ;;  %v425_v33 = vpop.f32.mrb[6].mxu1  ;;  %1680 = vmatprep.subr.bf16.mxu0 %v1679_v9  ;;  %v338_v34 = vpop.f32.mrb[7].mxu0  ;;  %1674 = vmatpush1.bf16.msra.mxu1 %v1673_v2  ;;  %v621_v28 = vmax.f32 %v422_v14, 0.0  ;;  %v1056_v9 = vld [vmem:[%s2597_s10 + $0x188] sm:$0xff] }
 0x17a   :  { %v426_v31 = vadd.f32 %v425_v33, %v2134_v52  ;;  %v339_v26 = vadd.f32 %v338_v34, %v2134_v52  ;;  %v427_v62 = vpop.f32.mrb[7].mxu1  ;;  %1682 = vmatpush1.bf16.msra.mxu0 %v1681_v7  ;;  %v1039_v34 = vld [vmem:[%s2597_s10 + $0x100] sm:$0xff] }
 0x17b   :  { %v625_v32 = vmax.f32 %v337_v16, 0.0  ;;  %v428_v61 = vadd.f32 %v427_v62, %v2134_v52 }
 0x17c   :  { %v627_v36 = vmax.f32 %v426_v31, 0.0  ;;  %v626_v17 = vmax.f32 %v339_v26, 0.0  ;;  %v496_v37 = vpop.f32.mrb[8].mxu0  ;;  %v1040_v31 = vld [vmem:[%s2597_s10 + $0x108] sm:$0xff] }
 0x17d   :  { %v1677_v38 = vpack.c.bf16 %v625_v32, %v618_v35  ;;  %v628_v39 = vmax.f32 %v428_v61, 0.0  ;;  %v1589_v29 = vpop.f32.mrb[8].mxu1  ;;  %v498_v41 = vpop.f32.mrb[9].mxu0  ;;  %v497_v48 = vadd.f32 %v496_v37, %v2119_v40  ;;  %v1057_v35 = vld [vmem:[%s2597_s10 + $0x190] sm:$0xff]  ;;  %v1058_v32 = vld [vmem:[%s2597_s10 + $0x198] sm:$0xff] }
 0x17e   :  { %v1685_v43 = vpack.c.bf16 %v627_v36, %v620_v27  ;;  %v1675_v44 = vpack.c.bf16 %v626_v17, %v619_v19  ;;  %v591_v45 = vadd.f32 %v1589_v29, %v2122_v42  ;;  %v585_v49 = vpop.f32.mrb[9].mxu1  ;;  %v499_v55 = vadd.f32 %v498_v41, %v2119_v40 }
 0x17f   :  { %v1683_v50 = vpack.c.bf16 %v628_v39, %v621_v28  ;;  %v586_v53 = vadd.f32 %v585_v49, %v2119_v40  ;;  %v608_v40 = vmax.f32 %v497_v48, 0.0  ;;  %v1735_v36 = vpack.c.bf16 %v1040_v31, %v1039_v34  ;;  %v1024_v28 = vld [vmem:[%s2597_s10 + $0x88] sm:$0xff]  ;;  %v1041_v39 = vld [vmem:[%s2597_s10 + $0x110] sm:$0xff]  ;;  %v1007_v49 = vld [vmem:[%s2597_s10] sm:$0xff] }
 0x180   :  { %v617_v54 = vmax.f32 %v591_v45, 0.0  ;;  %v502_v56 = vpop.f32.mrb[10].mxu0  ;;  %1676 = vmatprep.subr.bf16.mxu1 %v1675_v44  ;;  %v609_v47 = vmax.f32 %v499_v55, 0.0  ;;  %v1046_v34 = vld [vmem:[%s2597_s10 + $0x138] sm:$0xff] }
 0x181   :  { %v610_v57 = vmax.f32 %v586_v53, 0.0  ;;  %v503_v58 = vadd.f32 %v502_v56, %v2122_v42  ;;  %v1592_v59 = vpop.f32.mrb[10].mxu1  ;;  %1684 = vmatprep.subr.bf16.mxu0 %v1683_v50  ;;  %v504_v51 = vpop.f32.mrb[11].mxu0  ;;  %1678 = vmatpush1.bf16.msra.mxu1 %v1677_v38  ;;  %v1737_v38 = vpack.c.bf16 %v1058_v32, %v1057_v35  ;;  %v1008_v50 = vld [vmem:[%s2597_s10 + $0x8] sm:$0xff]  ;;  %v1025_v53 = vld [vmem:[%s2597_s10 + $0x90] sm:$0xff]  ;;  %v1063_v35 = vld [vmem:[%s2597_s10 + $0x1c0] sm:$0xff] }
 0x182   :  { %v601_v63 = vadd.f32 %v1592_v59, %v2134_v52  ;;  %v505_v0 = vadd.f32 %v504_v51, %v2122_v42  ;;  %v595_v3 = vpop.f32.mrb[11].mxu1  ;;  %1686 = vmatpush1.bf16.msra.mxu0 %v1685_v43  ;;  %v1055_v42 = vld [vmem:[%s2597_s10 + $0x180] sm:$0xff]  ;;  %v1703_v55 = vpack.c.bf16 %v1008_v50, %v1007_v49  ;;  %v1049_v50 = vld [vmem:[%s2597_s10 + $0x150] sm:$0xff] }
 0x183   :  { %v1696_v1 = vpack.c.bf16 %v617_v54, %v610_v57  ;;  %v615_v2 = vmax.f32 %v503_v58, 0.0  ;;  %v596_v4 = vadd.f32 %v595_v3, %v2131_v6  ;;  %1695 = vmatprep.subr.bf16.mxu0 %v1868_v5  ;;  %v1733_v33 = vpack.c.bf16 %v1056_v9, %v1055_v42  ;;  %v1026_v54 = vld [vmem:[%s2597_s10 + $0x98] sm:$0xff]  ;;  %v1009_v57 = vld [vmem:[%s2597_s10 + $0x10] sm:$0xff]  ;;  %v1027_v51 = vld [vmem:[%s2597_s10 + $0xa0] sm:$0xff] }
 0x184   :  { %v631_v7 = vmax.f32 %v601_v63, 0.0  ;;  %v616_v8 = vmax.f32 %v505_v0, 0.0  ;;  %v508_v30 = vpop.f32.mrb[12].mxu0  ;;  %1433 = vmatmul.mubr.msk.f32.vlgmr.msra.gmra.mrb[12].mxu1 %vm239_vm0, %v2151_v60  ;;  %v1705_v56 = vpack.c.bf16 %v1026_v54, %v1025_v53  ;;  %v1010_v58 = vld [vmem:[%s2597_s10 + $0x18] sm:$0xff]  ;;  %v1028_v63 = vld [vmem:[%s2597_s10 + $0xa8] sm:$0xff]  ;;  %v1059_v0 = vld [vmem:[%s2597_s10 + $0x1a0] sm:$0xff] }
 0x185   :  { %v1689_v46 = vpack.c.bf16 %v615_v2, %v608_v40  ;;  %v624_v10 = vmax.f32 %v596_v4, 0.0  ;;  %1434 = vmatmul.mubr.msk.f32.vlgmr.msra.gmra.mrb[16].mxu0 %vm239_vm0, %v2151_v60  ;;  %v510_v11 = vpop.f32.mrb[13].mxu0  ;;  %844 = vmatprep.mubr.f32.mxu1 %v1867_v13  ;;  %v509_v16 = vadd.f32 %v508_v30, %v2131_v6  ;;  %v1707_v59 = vpack.c.bf16 %v1010_v58, %v1009_v57  ;;  %v1011_v40 = vld [vmem:[%s2597_s10 + $0x20] sm:$0xff]  ;;  %v1029_v30 = vld [vmem:[%s2597_s10 + $0xb0] sm:$0xff]  ;;  %v1030_v42 = vld [vmem:[%s2597_s10 + $0xb8] sm:$0xff] }
 0x186   :  { %v1687_v12 = vpack.c.bf16 %v616_v8, %v609_v47  ;;  %1697 = vmatpush3.bf16.msra.mxu0 %v1696_v1  ;;  %1601 = vmatprep.mubr.msk.f32.mxu0 %vm1869_vm1, %v1867_v13  ;;  %v511_v26 = vadd.f32 %v510_v11, %v2131_v6  ;;  %v1023_v6 = vld [vmem:[%s2597_s10 + $0x80] sm:$0xff]  ;;  %v1709_v3 = vpack.c.bf16 %v1028_v63, %v1027_v51  ;;  %v1012_v1 = vld [vmem:[%s2597_s10 + $0x28] sm:$0xff]  ;;  %v1061_v9 = vld [vmem:[%s2597_s10 + $0x1b0] sm:$0xff] }
 0x187   :  { %v1699_v14 = vpack.c.bf16 %v631_v7, %v624_v10  ;;  %1698 = vmatprep.subr.bf16.mxu0 %v1868_v5  ;;  %v622_v17 = vmax.f32 %v509_v16, 0.0  ;;  %v1701_v45 = vpack.c.bf16 %v1024_v28, %v1023_v6  ;;  %v1711_v4 = vpack.c.bf16 %v1012_v1, %v1011_v40  ;;  %v1043_v47 = vld [vmem:[%s2597_s10 + $0x120] sm:$0xff]  ;;  %v1044_v7 = vld [vmem:[%s2597_s10 + $0x128] sm:$0xff]  ;;  %v1062_v10 = vld [vmem:[%s2597_s10 + $0x1b8] sm:$0xff] }
 0x188   :  { %v514_v62 = vpop.f32.mrb[14].mxu0  ;;  %1688 = vmatprep.subr.bf16.mxu1 %v1687_v12  ;;  %v623_v29 = vmax.f32 %v511_v26, 0.0  ;;  %v1743_v8 = vpack.c.bf16 %v1044_v7, %v1043_v47  ;;  %v1013_v11 = vld [vmem:[%s2597_s10 + $0x30] sm:$0xff]  ;;  %v1014_v12 = vld [vmem:[%s2597_s10 + $0x38] sm:$0xff]  ;;  %v1031_v26 = vld [vmem:[%s2597_s10 + $0xc0] sm:$0xff] }
 0x189   :  { %v515_v61 = vadd.f32 %v514_v62, %v2134_v52  ;;  %v516_v27 = vpop.f32.mrb[15].mxu0  ;;  %1690 = vmatpush1.bf16.msra.mxu1 %v1689_v46  ;;  %v1713_v46 = vpack.c.bf16 %v1030_v42, %v1029_v30  ;;  %v1715_v16 = vpack.c.bf16 %v1014_v12, %v1013_v11  ;;  %v1032_v62 = vld [vmem:[%s2597_s10 + $0xc8] sm:$0xff]  ;;  %v1035_v54 = vld [vmem:[%s2597_s10 + $0xe0] sm:$0xff]  ;;  %v1037_v1 = vld [vmem:[%s2597_s10 + $0xf0] sm:$0xff] }
 0x18a   :  { %v517_v19 = vadd.f32 %v516_v27, %v2134_v52  ;;  %1700 = vmatpush3.bf16.msra.mxu0 %v1699_v14  ;;  %v1042_v52 = vld [vmem:[%s2597_s10 + $0x118] sm:$0xff]  ;;  %v1745_v14 = vpack.c.bf16 %v1062_v10, %v1061_v9  ;;  %v1717_v32 = vpack.c.bf16 %v1032_v62, %v1031_v26  ;;  %v1015_v27 = vld [vmem:[%s2597_s10 + $0x40] sm:$0xff]  ;;  %v1016_v6 = vld [vmem:[%s2597_s10 + $0x48] sm:$0xff] }
 0x18b   :  { %v629_v37 = vmax.f32 %v515_v61, 0.0  ;;  %1734 = vmatprep.subr.bf16.mxu0 %v1733_v33  ;;  %v1739_v48 = vpack.c.bf16 %v1042_v52, %v1041_v39  ;;  %v1045_v33 = vld [vmem:[%s2597_s10 + $0x130] sm:$0xff]  ;;  %v1064_v61 = vld [vmem:[%s2597_s10 + $0x1c8] sm:$0xff]  ;;  %v1034_v39 = vld [vmem:[%s2597_s10 + $0xd8] sm:$0xff] }
 0x18c   :  { %v630_v41 = vmax.f32 %v517_v19, 0.0  ;;  %v1747_v31 = vpack.c.bf16 %v1046_v34, %v1045_v33  ;;  %v1749_v19 = vpack.c.bf16 %v1064_v61, %v1063_v35  ;;  %v1065_v52 = vld [vmem:[%s2597_s10 + $0x1d0] sm:$0xff]  ;;  %v1068_v58 = vld [vmem:[%s2597_s10 + $0x1e8] sm:$0xff]  ;;  %v1070_v7 = vld [vmem:[%s2597_s10 + $0x1f8] sm:$0xff]  ;;  %v2375_v33 = vstv %s2596_s9 }
 0x18d   :  { %v1693_v43 = vpack.c.bf16 %v629_v37, %v622_v17  ;;  %1602 = vmatmul.mubr.msk.f32.vlgmr.msra.gmra.mrb[18].mxu0 %vm239_vm0, %v2151_v60  ;;  %v1048_v17 = vld [vmem:[%s2597_s10 + $0x148] sm:$0xff]  ;;  %v1719_v37 = vpack.c.bf16 %v1016_v6, %v1015_v27  ;;  %v1022_v30 = vld [vmem:[%s2597_s10 + $0x78] sm:$0xff]  ;;  %v1087_v12 = vld [vmem:[%s2597_s10 + $0x280] sm:$0xff] }
 0x18e   :  { %v1691_v44 = vpack.c.bf16 %v630_v41, %v623_v29  ;;  %1736 = vmatpush3.bf16.msra.mxu0 %v1735_v36  ;;  %v1047_v36 = vld [vmem:[%s2597_s10 + $0x140] sm:$0xff]  ;;  %v1066_v41 = vld [vmem:[%s2597_s10 + $0x1d8] sm:$0xff]  ;;  %v1020_v51 = vld [vmem:[%s2597_s10 + $0x68] sm:$0xff] }
 0x18f   :  { %1738 = vmatprep.subr.bf16.mxu0 %v1737_v38  ;;  %v1751_v28 = vpack.c.bf16 %v1048_v17, %v1047_v36  ;;  %v1033_v38 = vld [vmem:[%s2597_s10 + $0xd0] sm:$0xff]  ;;  %v1054_v10 = vld [vmem:[%s2597_s10 + $0x178] sm:$0xff] }
 0x190   :  { %1692 = vmatprep.subr.bf16.mxu1 %v1691_v44  ;;  %v1721_v29 = vpack.c.bf16 %v1034_v39, %v1033_v38  ;;  %v1018_v44 = vld [vmem:[%s2597_s10 + $0x58] sm:$0xff]  ;;  %v2384_v38 = vld [vmem:[%s2590_s3] sm:$0xff] }
 0x191   :  { %1694 = vmatpush1.bf16.msra.mxu1 %v1693_v43  ;;  %v1017_v43 = vld [vmem:[%s2597_s10 + $0x50] sm:$0xff] }
 0x192   :  { %1702 = vmatprep.subr.bf16.mxu1 %v1701_v45  ;;  %1740 = vmatpush3.bf16.msra.mxu0 %v1739_v48  ;;  %v1753_v45 = vpack.c.bf16 %v1066_v41, %v1065_v52  ;;  %v1723_v49 = vpack.c.bf16 %v1018_v44, %v1017_v43  ;;  %v1050_v48 = vld [vmem:[%s2597_s10 + $0x158] sm:$0xff]  ;;  %v968_v44 = vrot.slane %v2384_v38, %v70_v21 }
 0x193   :  { %v1755_v53 = vpack.c.bf16 %v1050_v48, %v1049_v50  ;;  %v972_v21 = vrot.slane %v2384_v38, %v74_v18  ;;  %v1104_v18 = vld [vmem:[%s2597_s10 + $0x308] sm:$0xff] }
 0x194   :  { %1435 = vmatmul.mubr.msk.f32.vlgmr.msra.gmra.mrb[14].mxu1 %vm239_vm0, %v2151_v60  ;;  %v1060_v60 = vld [vmem:[%s2597_s10 + $0x1a8] sm:$0xff] }
 0x195   :  { %1704 = vmatpush3.bf16.msra.mxu1 %v1703_v55  ;;  %v1741_v2 = vpack.c.bf16 %v1060_v60, %v1059_v0  ;;  %v1036_v55 = vld [vmem:[%s2597_s10 + $0xe8] sm:$0xff] }
 0x196   :  { %1706 = vmatprep.subr.bf16.mxu1 %v1705_v56  ;;  %v1067_v56 = vld [vmem:[%s2597_s10 + $0x1e0] sm:$0xff]  ;;  %v1725_v57 = vpack.c.bf16 %v1036_v55, %v1035_v54  ;;  %v1052_v60 = vld [vmem:[%s2597_s10 + $0x168] sm:$0xff] }
 0x197   :  { %1742 = vmatprep.subr.bf16.mxu0 %v1741_v2  ;;  %v1757_v63 = vpack.c.bf16 %v1068_v58, %v1067_v56  ;;  %v1038_v2 = vld [vmem:[%s2597_s10 + $0xf8] sm:$0xff]  ;;  %v1071_v58 = vld [vmem:[%s2597_s10 + $0x200] sm:$0xff] }
 0x198   :  { %1744 = vmatpush3.bf16.msra.mxu0 %v1743_v8  ;;  %v1729_v47 = vpack.c.bf16 %v1038_v2, %v1037_v1  ;;  %v1021_v8 = vld [vmem:[%s2597_s10 + $0x70] sm:$0xff]  ;;  %v1090_v2 = vld [vmem:[%s2597_s10 + $0x298] sm:$0xff] }
 0x199   :  { %1708 = vmatpush3.bf16.msra.mxu1 %v1707_v59  ;;  %1746 = vmatprep.subr.bf16.mxu0 %v1745_v14  ;;  %v1019_v59 = vld [vmem:[%s2597_s10 + $0x60] sm:$0xff]  ;;  %v1731_v9 = vpack.c.bf16 %v1022_v30, %v1021_v8  ;;  %v1088_v14 = vld [vmem:[%s2597_s10 + $0x288] sm:$0xff] }
 0x19a   :  { %1710 = vmatprep.subr.bf16.mxu1 %v1709_v3  ;;  %v1727_v0 = vpack.c.bf16 %v1020_v51, %v1019_v59  ;;  %v1051_v3 = vld [vmem:[%s2597_s10 + $0x160] sm:$0xff]  ;;  %v980_v51 = vrot.slane %v2384_v38, %v82_v20  ;;  %v1089_v20 = vld [vmem:[%s2597_s10 + $0x290] sm:$0xff] }
 0x19b   :  { %v1759_v40 = vpack.c.bf16 %v1052_v60, %v1051_v3 }
 0x19c   :  { %1748 = vmatpush3.bf16.msra.mxu0 %v1747_v31 }
 0x19d   :  { %1712 = vmatpush3.bf16.msra.mxu1 %v1711_v4  ;;  %1750 = vmatprep.subr.bf16.mxu0 %v1749_v19  ;;  %v1069_v4 = vld [vmem:[%s2597_s10 + $0x1f0] sm:$0xff] }
 0x19e   :  { %1714 = vmatprep.subr.bf16.mxu1 %v1713_v46  ;;  %v1761_v42 = vpack.c.bf16 %v1070_v7, %v1069_v4  ;;  %v1053_v46 = vld [vmem:[%s2597_s10 + $0x170] sm:$0xff] }
 0x19f   :  { %v1763_v11 = vpack.c.bf16 %v1054_v10, %v1053_v46  ;;  %v1769_v46 = vpack.c.bf16 %v1090_v2, %v1089_v20  ;;  %v1073_v10 = vld [vmem:[%s2597_s10 + $0x210] sm:$0xff]  ;;  %v1114_v20 = vld [vmem:[%s2597_s10 + $0x358] sm:$0xff]  ;;  %v1099_v2 = vld [vmem:[%s2597_s10 + $0x2e0] sm:$0xff] }
 0x1a0   :  { %1752 = vmatpush3.bf16.msra.mxu0 %v1751_v28 }
 0x1a1   :  { %1716 = vmatpush3.bf16.msra.mxu1 %v1715_v16  ;;  %1754 = vmatprep.subr.bf16.mxu0 %v1753_v45  ;;  %v1765_v16 = vpack.c.bf16 %v1088_v14, %v1087_v12  ;;  %v1105_v12 = vld [vmem:[%s2597_s10 + $0x310] sm:$0xff] }
 0x1a2   :  { %1718 = vmatprep.subr.bf16.mxu1 %v1717_v32 }
 0x1a4   :  { %1756 = vmatpush3.bf16.msra.mxu0 %v1755_v53 }
 0x1a5   :  { %1720 = vmatpush3.bf16.msra.mxu1 %v1719_v37  ;;  %1758 = vmatprep.subr.bf16.mxu0 %v1757_v63  ;;  %v1072_v63 = vld [vmem:[%s2597_s10 + $0x208] sm:$0xff] }
 0x1a6   :  { %1722 = vmatprep.subr.bf16.mxu1 %v1721_v29  ;;  %v1767_v7 = vpack.c.bf16 %v1072_v63, %v1071_v58  ;;  %v1080_v58 = vld [vmem:[%s2597_s10 + $0x248] sm:$0xff] }
 0x1a8   :  { %1760 = vmatpush3.bf16.msra.mxu0 %v1759_v40 }
 0x1a9   :  { %1724 = vmatpush3.bf16.msra.mxu1 %v1723_v49  ;;  %1762 = vmatprep.subr.bf16.mxu0 %v1761_v42  ;;  %v976_v49 = vrot.slane %v2384_v38, %v78_v22 }
 0x1aa   :  { %1726 = vmatprep.subr.bf16.mxu1 %v1725_v57 }
 0x1ac   :  { %1764 = vmatpush3.bf16.msra.mxu0 %v1763_v11  ;;  %v1074_v11 = vld [vmem:[%s2597_s10 + $0x218] sm:$0xff] }
 0x1ad   :  { %1728 = vmatpush3.bf16.msra.mxu1 %v1727_v0  ;;  %1797 = vmatprep.subr.bf16.mxu0 %v1868_v5  ;;  %v1103_v0 = vld [vmem:[%s2597_s10 + $0x300] sm:$0xff] }
 0x1ae   :  { %1730 = vmatprep.subr.bf16.mxu1 %v1729_v47  ;;  %v1798_v8 = vpack.c.bf16 %v1104_v18, %v1103_v0 }
 0x1b1   :  { %1732 = vmatpush3.bf16.msra.mxu1 %v1731_v9 }
 0x1b2   :  { %1766 = vmatprep.subr.bf16.mxu1 %v1765_v16 }
 0x257   :  { %v704_v34 = vpop.f32.mrb[12].mxu1 }
 0x258   :  { %v705_v31 = vadd.f32 %v704_v34, %v2375_v33  ;;  %v775_v26 = vpop.f32.mrb[16].mxu0  ;;  %v706_v62 = vpop.f32.mrb[13].mxu1  ;;  %v1106_v34 = vld [vmem:[%s2597_s10 + $0x318] sm:$0xff] }
 0x259   :  { %v776_v35 = vadd.f32 %v775_v26, %v2375_v33  ;;  %v707_v32 = vadd.f32 %v706_v62, %v2375_v33  ;;  %v777_v61 = vpop.f32.mrb[17].mxu0  ;;  %v1092_v26 = vld [vmem:[%s2597_s10 + $0x2a8] sm:$0xff]  ;;  %v1771_v62 = vpack.c.bf16 %v1074_v11, %v1073_v10  ;;  %v1115_v11 = vld [vmem:[%s2597_s10 + $0x360] sm:$0xff] }
 0x25a   :  { %v928_v27 = vmul.f32 1.442695, %v705_v31  ;;  %v778_v19 = vadd.f32 %v777_v61, %v2375_v33  ;;  %vm921_vm2 = vcmp.gt.f32.partialorder %v705_v31, 0.0  ;;  %v1075_v61 = vld [vmem:[%s2597_s10 + $0x220] sm:$0xff]  ;;  %v1084_v10 = vld [vmem:[%s2597_s10 + $0x268] sm:$0xff] }
 0x25b   :  { %v932_v6 = vmul.f32 1.442695, %v776_v35  ;;  %v930_v36 = vmul.f32 1.442695, %v707_v32  ;;  %vm923_vm3 = vcmp.gt.f32.partialorder %v776_v35, 0.0  ;;  %vm922_vm4 = vcmp.gt.f32.partialorder %v707_v32, 0.0 }
 0x25c   :  { %1828 = vpow2.f32 %v928_v27  ;;  %v934_v17 = vmul.f32 1.442695, %v778_v19  ;;  %vm924_vm5 = vcmp.gt.f32.partialorder %v778_v19, 0.0  ;;  %v1076_v27 = vld [vmem:[%s2597_s10 + $0x228] sm:$0xff] }
 0x25d   :  { %1830 = vpow2.f32 %v932_v6 }
 0x25e   :  { %1832 = vpow2.f32 %v930_v36  ;;  %v1108_v36 = vld [vmem:[%s2597_s10 + $0x328] sm:$0xff] }
 0x25f   :  { %1834 = vpow2.f32 %v934_v17  ;;  %v1093_v17 = vld [vmem:[%s2597_s10 + $0x2b0] sm:$0xff] }
 0x260   :  { %v917_v37 = vpop.f32.mrb[18].mxu0 }
 0x261   :  { %v1603_v28 = vpop.f32.mrb[19].mxu0  ;;  %v2433_v16 = vadd.f32 %v917_v37, %v2375_v33  ;;  %v1094_v37 = vld [vmem:[%s2597_s10 + $0x2b8] sm:$0xff] }
 0x262   :  { %v1775_v28 = vpack.c.bf16 %v1076_v27, %v1075_v61  ;;  %v1086_v61 = vld [vmem:[%s2597_s10 + $0x278] sm:$0xff] }
 0x263   :  { %v940_v6 = vmul.f32 1.442695, %v2433_v16  ;;  %vm927_vm8 = vcmp.gt.f32.partialorder %v2433_v16, 0.0 }
 0x266   :  { %v1829_v39 = vpop.eup %1828 }
 0x267   :  { %v1831_v52 = vpop.eup %1830  ;;  %v1437_v29 = vadd.f32 -1.0, %v1829_v39  ;;  %v846_v41 = vpop.f32.mrb[14].mxu1 }
 0x268   :  { %v1833_v43 = vpop.eup %1832  ;;  %v1439_v45 = vadd.f32 -1.0, %v1831_v52  ;;  %v848_v50 = vpop.f32.mrb[15].mxu1  ;;  %v2421_v42 = vadd.f32 %v846_v41, %v2375_v33  ;;  %v1777_v52 = vpack.c.bf16 %v1094_v37, %v1093_v17  ;;  %v1078_v41 = vld [vmem:[%s2597_s10 + $0x238] sm:$0xff] }
 0x269   :  { %v1835_v48 = vpop.eup %1834  ;;  %v949_v53 = vsel %vm921_vm2, %v705_v31, %v1437_v29  ;;  %v1438_v54 = vadd.f32 -1.0, %v1833_v43  ;;  %v2393_v55 = vadd.f32 %v848_v50, %v2375_v33  ;;  %v1091_v31 = vld [vmem:[%s2597_s10 + $0x2a0] sm:$0xff]  ;;  %v1077_v29 = vld [vmem:[%s2597_s10 + $0x230] sm:$0xff] }
 0x26a   :  { %v951_v56 = vsel %vm923_vm3, %v776_v35, %v1439_v45  ;;  %v1440_v57 = vadd.f32 -1.0, %v1835_v48  ;;  %v956_v22 = vadd.f32 1.0, %v949_v53  ;;  %v936_v33 = vmul.f32 1.442695, %v2421_v42  ;;  %v1109_v43 = vld [vmem:[%s2597_s10 + $0x330] sm:$0xff]  ;;  %v1095_v45 = vld [vmem:[%s2597_s10 + $0x2c0] sm:$0xff] }
 0x26b   :  { %v950_v59 = vsel %vm922_vm4, %v707_v32, %v1438_v54  ;;  %v958_v3 = vadd.f32 1.0, %v951_v56  ;;  %v938_v1 = vmul.f32 1.442695, %v2393_v55  ;;  %v1801_v35 = vpack.c.bf16 %v1106_v34, %v1105_v12  ;;  %v1101_v34 = vld [vmem:[%s2597_s10 + $0x2f0] sm:$0xff] }
 0x26c   :  { %v957_v60 = vadd.f32 1.0, %v950_v59  ;;  %v952_v40 = vsel %vm924_vm5, %v778_v19, %v1440_v57  ;;  %v1000_v30 = vmul.f32 %v968_v44, %v956_v22  ;;  %v1773_v32 = vpack.c.bf16 %v1092_v26, %v1091_v31  ;;  %v1107_v19 = vld [vmem:[%s2597_s10 + $0x320] sm:$0xff]  ;;  %v1110_v44 = vld [vmem:[%s2597_s10 + $0x338] sm:$0xff] }
 0x26d   :  { %v959_v4 = vadd.f32 1.0, %v952_v40  ;;  %1836 = vpow2.f32 %v938_v1  ;;  %v1002_v14 = vmul.f32 %v976_v49, %v958_v3  ;;  %v1804_v39 = vpack.c.bf16 %v1108_v36, %v1107_v19  ;;  %v1096_v49 = vld [vmem:[%s2597_s10 + $0x2c8] sm:$0xff]  ;;  %v1111_v22 = vld [vmem:[%s2597_s10 + $0x340] sm:$0xff]  ;;  %v1082_v40 = vld [vmem:[%s2597_s10 + $0x258] sm:$0xff] }
 0x26e   :  { %v1001_v47 = vmul.f32 %v972_v21, %v957_v60  ;;  %1838 = vpow2.f32 %v936_v33  ;;  %vm926_vm6 = vcmp.gt.f32.partialorder %v2393_v55, 0.0  ;;  %v1779_v48 = vpack.c.bf16 %v1078_v41, %v1077_v29  ;;  %v1079_v21 = vld [vmem:[%s2597_s10 + $0x240] sm:$0xff]  ;;  %v1081_v60 = vld [vmem:[%s2597_s10 + $0x250] sm:$0xff]  ;;  %v1102_v31 = vld [vmem:[%s2597_s10 + $0x2f8] sm:$0xff] }
 0x26f   :  { %v1003_v9 = vmul.f32 %v980_v51, %v959_v4  ;;  %1840 = vpow2.f32 %v940_v6  ;;  %v988_v53 = vrot.slane %v2384_v38, %v90_v23  ;;  %v1807_v56 = vpack.c.bf16 %v1110_v44, %v1109_v43  ;;  %v1112_v23 = vld [vmem:[%s2597_s10 + $0x348] sm:$0xff]  ;;  %v1098_v51 = vld [vmem:[%s2597_s10 + $0x2d8] sm:$0xff]  ;;  %v1113_v1 = vld [vmem:[%s2597_s10 + $0x350] sm:$0xff] }
 0x270   :  { %1183 = vmatprep.mubr.f32.mxu1 %v1001_v47  ;;  %v1781_v57 = vpack.c.bf16 %v1096_v49, %v1095_v45  ;;  %v1783_v0 = vpack.c.bf16 %v1080_v58, %v1079_v21  ;;  %v1810_v18 = vpack.c.bf16 %v1112_v23, %v1111_v22  ;;  %v1100_v4 = vld [vmem:[%s2597_s10 + $0x2e8] sm:$0xff]  ;;  %vm925_vm7 = vcmp.gt.f32.partialorder %v2421_v42, 0.0  ;;  %v1117_v19 = vld [vmem:[%s2597_s10 + $0x370] sm:$0xff]  ;;  %v1118_v6 = vld [vmem:[%s2597_s10 + $0x378] sm:$0xff] }
 0x271   :  { %1253 = vmatprep.mubr.f32.mxu0 %v1003_v9  ;;  %1184 = vmatmul.mubr.f32.vlgmr.msra.gmra.mrb[16].mxu1 %v1000_v30  ;;  %v1813_v30 = vpack.c.bf16 %v1114_v20, %v1113_v1  ;;  %v1789_v9 = vpack.c.bf16 %v1100_v4, %v1099_v2 }
 0x272   :  { %1254 = vmatmul.mubr.f32.vlgmr.msra.gmra.mrb[20].mxu0 %v1002_v14  ;;  %1768 = vmatpush3.bf16.msra.mxu1 %v1767_v7  ;;  %v1116_v14 = vld [vmem:[%s2597_s10 + $0x368] sm:$0xff] }
 0x273   :  { %1799 = vmatpush3.bf16.msra.mxu0 %v1798_v8  ;;  %1770 = vmatprep.subr.bf16.mxu1 %v1769_v46  ;;  %v1787_v8 = vpack.c.bf16 %v1082_v40, %v1081_v60  ;;  %v1083_v46 = vld [vmem:[%s2597_s10 + $0x260] sm:$0xff]  ;;  %v1816_v33 = vpack.c.bf16 %v1116_v14, %v1115_v11 }
 0x274   :  { %1800 = vmatprep.subr.bf16.mxu0 %v1868_v5  ;;  %1636 = vmatprep.mubr.msk.f32.mxu0 %vm1869_vm1, %v1867_v13 }
 0x276   :  { %1772 = vmatpush3.bf16.msra.mxu1 %v1771_v62  ;;  %v1791_v62 = vpack.c.bf16 %v1084_v10, %v1083_v46 }
 0x277   :  { %1802 = vmatpush3.bf16.msra.mxu0 %v1801_v35  ;;  %1774 = vmatprep.subr.bf16.mxu1 %v1773_v32  ;;  %v1837_v13 = vpop.eup %1836  ;;  %v1793_v35 = vpack.c.bf16 %v1102_v31, %v1101_v34  ;;  %v1085_v32 = vld [vmem:[%s2597_s10 + $0x270] sm:$0xff] }
 0x278   :  { %1803 = vmatprep.subr.bf16.mxu0 %v1868_v5  ;;  %v1442_v50 = vadd.f32 -1.0, %v1837_v13  ;;  %v1839_v47 = vpop.eup %1838  ;;  %v1795_v17 = vpack.c.bf16 %v1086_v61, %v1085_v32 }
 0x279   :  { %v1841_v7 = vpop.eup %1840  ;;  %v1441_v12 = vadd.f32 -1.0, %v1839_v47 }
 0x27a   :  { %1776 = vmatpush3.bf16.msra.mxu1 %v1775_v28  ;;  %v954_v54 = vsel %vm926_vm6, %v2393_v55, %v1442_v50  ;;  %v1097_v55 = vld [vmem:[%s2597_s10 + $0x2d0] sm:$0xff]  ;;  %v1443_v26 = vadd.f32 -1.0, %v1841_v7  ;;  %v984_v28 = vrot.slane %v2384_v38, %v86_v25 }
 0x27b   :  { %1805 = vmatpush3.bf16.msra.mxu0 %v1804_v39  ;;  %1778 = vmatprep.subr.bf16.mxu1 %v1777_v52  ;;  %v961_v59 = vadd.f32 1.0, %v954_v54  ;;  %v1785_v3 = vpack.c.bf16 %v1098_v51, %v1097_v55  ;;  %v953_v27 = vsel %vm925_vm7, %v2421_v42, %v1441_v12  ;;  %v1819_v42 = vpack.c.bf16 %v1118_v6, %v1117_v19 }
 0x27c   :  { %1806 = vmatprep.subr.bf16.mxu0 %v1868_v5  ;;  %v955_v36 = vsel %vm927_vm8, %v2433_v16, %v1443_v26  ;;  %v960_v37 = vadd.f32 1.0, %v953_v27  ;;  %v992_v52 = vrot.slane %v2384_v38, %v94_v24 }
 0x27d   :  { %v1005_v63 = vmul.f32 %v988_v53, %v961_v59  ;;  %v962_v39 = vadd.f32 1.0, %v955_v36 }
 0x27e   :  { %1780 = vmatpush3.bf16.msra.mxu1 %v1779_v48  ;;  %v1004_v29 = vmul.f32 %v984_v28, %v960_v37 }
 0x27f   :  { %1808 = vmatpush3.bf16.msra.mxu0 %v1807_v56  ;;  %1782 = vmatprep.subr.bf16.mxu1 %v1781_v57  ;;  %v1006_v16 = vmul.f32 %v992_v52, %v962_v39 }
 0x280   :  { %1323 = vmatprep.mubr.f32.mxu1 %v1005_v63  ;;  %1809 = vmatprep.subr.bf16.mxu0 %v1868_v5 }
 0x282   :  { %1784 = vmatpush3.bf16.msra.mxu1 %v1783_v0 }
 0x283   :  { %1811 = vmatpush3.bf16.msra.mxu0 %v1810_v18  ;;  %1786 = vmatprep.subr.bf16.mxu1 %v1785_v3 }
 0x284   :  { %1812 = vmatprep.subr.bf16.mxu0 %v1868_v5 }
 0x286   :  { %1788 = vmatpush3.bf16.msra.mxu1 %v1787_v8 }
 0x287   :  { %1814 = vmatpush3.bf16.msra.mxu0 %v1813_v30  ;;  %1790 = vmatprep.subr.bf16.mxu1 %v1789_v9 }
 0x288   :  { %1815 = vmatprep.subr.bf16.mxu0 %v1868_v5 }
 0x28a   :  { %1792 = vmatpush3.bf16.msra.mxu1 %v1791_v62 }
 0x28b   :  { %1817 = vmatpush3.bf16.msra.mxu0 %v1816_v33  ;;  %1794 = vmatprep.subr.bf16.mxu1 %v1793_v35 }
 0x28c   :  { %1818 = vmatprep.subr.bf16.mxu0 %v1868_v5  ;;  %v1399_v5 = vld [vmem:[%s2587_s0] sm:$0x1] }
 0x28e   :  { %1796 = vmatpush3.bf16.msra.mxu1 %v1795_v17 }
 0x28f   :  { %1820 = vmatpush3.bf16.msra.mxu0 %v1819_v42 }
 0x291   :  { %1324 = vmatmul.mubr.f32.vlgmr.msra.gmra.mrb[18].mxu1 %v1004_v29 }
 0x292   :  { %1637 = vmatmul.mubr.f32.vlgmr.msra.gmra.mrb[22].mxu0 %v1006_v16 }
 0x344   :  { %v1489_v41 = vpop.f32.mrb[16].mxu1 }
 0x345   :  { %v1524_v43 = vpop.f32.mrb[20].mxu0  ;;  %v1490_v13 = vpop.f32.mrb[17].mxu1 }
 0x346   :  { %v1491_v25 = vadd.f32 %v1490_v13, %v1489_v41  ;;  %v1525_v44 = vpop.f32.mrb[21].mxu0 }
 0x347   :  { %v1526_v45 = vadd.f32 %v1525_v44, %v1524_v43 }
 0x349   :  { %v1256_v49 = vadd.f32 %v1526_v45, %v1491_v25 }
 0x364   :  { %v1559_v50 = vpop.f32.mrb[18].mxu1 }
 0x365   :  { %v1395_v48 = vpop.f32.mrb[22].mxu0  ;;  %v1560_v15 = vpop.f32.mrb[19].mxu1 }
 0x366   :  { %v1561_v53 = vadd.f32 %v1560_v15, %v1559_v50  ;;  %v1638_v24 = vpop.f32.mrb[23].mxu0 }
 0x368   :  { %v1326_v38 = vadd.f32 %v1561_v53, %v1256_v49 }
 0x36a   :  { %v1396_v54 = vadd.f32 %v1395_v48, %v1326_v38 }
 0x36c   :  { %v1400_v56 = vmul.f32 %v1399_v5, %v1396_v54 }
 0x36e   :  { %1402 = vst.msk [vmem:[#allocation3] sm:$0x1] %vm1401_vm9, %v1400_v56 }
 0x36f   :  { %1853 = shalt.err (!%p1850_p4)
}
 0x370   :  { %s1854_s24 = scalar_lea.hbm %s2598_s11, 16 }
 0x371   :  { %p1855_p5 = scmp.ne.s32.totalorder %s2598_s11, %s1854_s24  ;;  %p1858_p6 = scmp.lt.u32.totalorder %s1854_s24, %s2598_s11 }
 0x373   :  { %p1860_p7 = pnand %p1858_p6, %p1855_p5 }
 0x375   :  { %1863 = shalt.err (!%p1860_p7)
}
 0x376   :  { %1412 = dma.vmem_to_hbm [thread:$0]  %s1410_s22, 16, %s2598_s11, [#allocation4]  }
 0x377   :  { %1864 = dma.done.wait [#allocation4], 16  }
 0x378   :  { %1865 = vsyncadd [#allocation4], 4294967280 }
 0x379   :  { %1416 = vsyncpa [#allocation4], 1 }

</bundles_post_ra>
